<compile_context>
chip_gen: v5e
topology: v5e:2x2
jax: 0.10.0
libtpu: 0.0.40
codegen_flags: <defaults>
</compile_context>

<pallas_src>
import jax
import jax.numpy as jnp
from jax.experimental import pallas as pl
from jax.experimental.pallas import tpu as pltpu


def _round_up(x, m):
    return ((x + m - 1) // m) * m


def _tpu_vmem_bytes():
    """Physical VMEM per core; conservative (v7x = 64 MiB) if the query fails."""
    try:
        info = pltpu.get_tpu_info()
        v = getattr(info, "vmem_capacity_bytes", None)
        if v:
            return int(v)
    except Exception:
        pass
    return 64 * 1024 * 1024


def _fused_step_bytes(Bb, Np, Fp, Hp, Op, out_bytes, cdt_bytes=2):
    """VMEM estimate for one fused grid step (double-buffered ins/outs + f32 temps)."""
    dbuf = 2
    ins = dbuf * (Bb * Np * Np + Bb * Np * Fp) * cdt_bytes
    outs = dbuf * Bb * Np * Op * out_bytes
    weights = dbuf * ((Fp * Hp + Hp * Op) * cdt_bytes + (Hp + Op) * 4)
    temps = 3 * Bb * Np * max(Fp, Hp, Op) * 4
    return ins + outs + weights + temps


def _tiled_step_bytes(tr, Np, Fout, out_bytes, cdt_bytes=2):
    dbuf = 2
    ins = dbuf * (tr * Np + Np * Fout) * cdt_bytes
    outs = dbuf * tr * Fout * out_bytes
    temps = 2 * tr * Fout * 4
    return ins + outs + temps + dbuf * Fout * 4


def _pick_batch_block(B, Np, fits, row_target=256):
    """Largest VMEM-fitting divisor of B; prefer >=2 grid steps and ~row_target MXU rows."""
    divs = [d for d in range(1, B + 1) if B % d == 0]
    usable = [d for d in divs if fits(d)]
    if not usable:
        return None
    if B >= 2:
        two_step = [d for d in usable if B // d >= 2]   # keep work for both v7x cores
        if two_step:
            usable = two_step
    enough_rows = [d for d in usable if d * Np >= row_target]
    return enough_rows[0] if enough_rows else usable[-1]


def _pick_row_tile(Np, fits, target=256):
    """Row tile (multiple of 16, divides Np) for the tiled path; keep >=2 tiles."""
    target = max(16, min(target, Np // 2)) if Np >= 32 else Np
    best = None
    for tr in range(16, Np + 1, 16):
        if Np % tr == 0 and tr <= target and fits(tr):
            best = tr
    return best if best is not None else 16


def _plan(B, N, F_in, n_h, n_out, out_dtype, mode="auto", batch_block=None):
    """VMEM-aware plan: padded dims, fused vs tiled path, block sizes, matmul orders."""
    Np = _round_up(N, 16)        # sublane-aligned rows (bf16 packing = 16)
    Fp = _round_up(F_in, 128)    # lane-dense feature / hidden / output widths
    Hp = _round_up(n_h, 128)
    Op = _round_up(n_out, 128)
    out_bytes = jnp.dtype(out_dtype).itemsize

    vmem_phys = _tpu_vmem_bytes()
    vmem_limit = (vmem_phys * 7) // 8       # ~56 MiB on v7x, ~112 MiB on v5e/v6e
    budget = (vmem_limit * 3) // 4          # live-buffer budget; leaves pipeline headroom

    def fused_fits(Bb):
        return _fused_step_bytes(Bb, Np, Fp, Hp, Op, out_bytes) <= budget

    if batch_block is not None:
        if B % batch_block:
            raise ValueError(f"batch_block={batch_block} must divide batch={B}")
        Bb = batch_block if fused_fits(batch_block) else None
    else:
        Bb = _pick_batch_block(B, Np, fused_fits)

    use_tiled = (mode == "tiled"
                 or (mode == "auto"
                     and (Bb is None or (B // Bb < 2 and Np >= 256))))
    if mode == "fused" and Bb is None:
        raise ValueError(
            "fused gcn_network2 block does not fit the VMEM budget "
            f"({budget // (1 << 20)} MiB); use mode='tiled'")

    plan = dict(Np=Np, Fp=Fp, Hp=Hp, Op=Op, vmem_limit=int(vmem_limit))
    if use_tiled:
        def t_fits(tr):
            return _tiled_step_bytes(tr, Np, max(Hp, Op), 4) <= budget
        plan.update(path="tiled", tr=_pick_row_tile(Np, t_fits),
                    orders=(False, False))   # x @ W first, then row-tiled aggregation
    else:
        # Matmul associativity: aggregate first when the contraction width is
        # smaller (N^2 term costs 2*N^2*Fin vs 2*N^2*Fout FLOPs) -> big win on v5e.
        plan.update(path="fused", Bb=Bb, orders=(Fp <= Hp, Hp <= Op))
    return plan


# ----------------------------------------------------------------------------- kernels


def _make_fused_gcn2_kernel(agg_first_1, agg_first_2):
    """Fused 2-layer GCN over a block of Bb graphs; activations never leave VMEM."""

    def kernel(seq_ref, adj_ref, w1_ref, b1_ref, w2_ref, b2_ref, alpha_ref, out_ref):
        Bb, Np, _ = seq_ref.shape
        cdt = adj_ref.dtype
        a1 = alpha_ref[0]          # PReLU slopes: hoisted SMEM scalar reads
        a2 = alpha_ref[1]

        def layer(x, w_ref, b_ref, alpha, agg_first):
            fin, fout = w_ref.shape
            if agg_first:          # (adj @ x) @ W   -- cheaper N^2 term when fin <= fout
                t = jnp.einsum("bmn,bnf->bmf", adj_ref[...], x,
                               preferred_element_type=jnp.float32)
                o = jnp.dot(t.astype(cdt).reshape(Bb * Np, fin), w_ref[...],
                            preferred_element_type=jnp.float32)
            else:                  # adj @ (x @ W)
                xw = jnp.dot(x.reshape(Bb * Np, fin), w_ref[...],
                             preferred_element_type=jnp.float32)
                o = jnp.einsum("bmn,bnf->bmf", adj_ref[...],
                               xw.astype(cdt).reshape(Bb, Np, fout),
                               preferred_element_type=jnp.float32)
            o = o.reshape(Bb, Np, fout) + b_ref[...]
            return jnp.where(o > 0.0, o, alpha * o)

        h1 = layer(seq_ref[...], w1_ref, b1_ref, a1, agg_first_1)
        # TODO(synk): training-mode dropout (pltpu.prng_*) not implemented;
        # F.dropout is identity at inference.
        out = layer(h1.astype(cdt), w2_ref, b2_ref, a2, agg_first_2)
        out_ref[...] = out.astype(out_ref.dtype)

    return kernel


def _tiled_aggregate_kernel(z_ref, adj_ref, b_ref, alpha_ref, out_ref):
    """out_tile = PReLU(adj[rows, :] @ z + b) for one (batch, row-tile) grid point."""
    a = alpha_ref[0]
    o = jnp.einsum("bmn,bnf->bmf", adj_ref[...], z_ref[...],
                   preferred_element_type=jnp.float32) + b_ref[...]
    out_ref[...] = jnp.where(o > 0.0, o, a * o).astype(out_ref.dtype)


def _tiled_aggregate(z, adj_c, bias, alpha, tr, out_dtype, vmem_limit):
    B, Np, Fout = z.shape
    return pl.pallas_call(
        _tiled_aggregate_kernel,
        out_shape=jax.ShapeDtypeStruct((B, Np, Fout), out_dtype),
        grid_spec=pltpu.PrefetchScalarGridSpec(
            num_scalar_prefetch=0,
            grid=(B, Np // tr),
            in_specs=[
                # z is reused by every row tile of a graph: its block index only
                # changes with b, so Pallas fetches it once per batch element.
                pl.BlockSpec((1, Np, Fout), lambda b, r: (b, 0, 0)),
                pl.BlockSpec((1, tr, Np), lambda b, r: (b, r, 0)),
                pl.BlockSpec((1, Fout), lambda b, r: (0, 0)),
                pl.BlockSpec(memory_space=pltpu.SMEM),
            ],
            out_specs=pl.BlockSpec((1, tr, Fout), lambda b, r: (b, r, 0)),
        ),
        compiler_params=pltpu.CompilerParams(
            dimension_semantics=("parallel", "parallel"),
            vmem_limit_bytes=vmem_limit,
        ),
    )(z, adj_c, bias, alpha)


# ----------------------------------------------------------------------------- wrapper


def gcn_network2_forward(seq1, adj, params, drop_rate=0.0,
                         compute_dtype=jnp.bfloat16, out_dtype=jnp.float32,
                         mode="auto", batch_block=None):
    """Forward pass of gcn_network2 (dense adj path, inference mode)."""
    B, N, F_in = seq1.shape
    n_h = params["w1"].shape[1]
    n_out = params["w2"].shape[1]
    plan = _plan(B, N, F_in, n_h, n_out, out_dtype, mode=mode, batch_block=batch_block)
    Np, Fp, Hp, Op = plan["Np"], plan["Fp"], plan["Hp"], plan["Op"]

    # Host-side prep: bf16 casts halve adj/seq HBM traffic and feed the MXU; zero
    # padding of all widths keeps vregs lane-dense and is provably inert (padded W1
    # cols -> zero hidden cols -> killed by zero W2 rows; padded adj rows/cols never
    # feed a real output row).
    # TODO(synk): int8 (v5e/v6e) / fp8 (v7x) quantization of the row-normalized adj
    # would halve the dominant HBM stream; left out pending an accuracy gate.
    seq_c = jnp.pad(seq1.astype(compute_dtype), ((0, 0), (0, Np - N), (0, Fp - F_in)))
    adj_c = jnp.pad(adj.astype(compute_dtype), ((0, 0), (0, Np - N), (0, Np - N)))
    w1 = jnp.pad(params["w1"].astype(compute_dtype), ((0, Fp - F_in), (0, Hp - n_h)))
    b1 = jnp.pad(params["b1"].astype(jnp.float32), ((0, 0), (0, Hp - n_h)))
    w2 = jnp.pad(params["w2"].astype(compute_dtype), ((0, Hp - n_h), (0, Op - n_out)))
    b2 = jnp.pad(params["b2"].astype(jnp.float32), ((0, 0), (0, Op - n_out)))
    alphas = params["alpha"].astype(jnp.float32)

    # TODO(synk): sparse=True (torch.spmm) path not implemented (dense bmm only).
    if plan["path"] == "fused":
        Bb = plan["Bb"]
        kernel = _make_fused_gcn2_kernel(*plan["orders"])
        out = pl.pallas_call(
            kernel,
            out_shape=jax.ShapeDtypeStruct((B, Np, Op), out_dtype),
            grid_spec=pltpu.PrefetchScalarGridSpec(
                num_scalar_prefetch=0,
                grid=(B // Bb,),
                in_specs=[
                    pl.BlockSpec((Bb, Np, Fp), lambda b: (b, 0, 0)),
                    pl.BlockSpec((Bb, Np, Np), lambda b: (b, 0, 0)),
                    pl.BlockSpec((Fp, Hp), lambda b: (0, 0)),
                    pl.BlockSpec((1, Hp), lambda b: (0, 0)),
                    pl.BlockSpec((Hp, Op), lambda b: (0, 0)),
                    pl.BlockSpec((1, Op), lambda b: (0, 0)),
                    pl.BlockSpec(memory_space=pltpu.SMEM),
                ],
                out_specs=pl.BlockSpec((Bb, Np, Op), lambda b: (b, 0, 0)),
            ),
            compiler_params=pltpu.CompilerParams(
                dimension_semantics=("parallel",),
                vmem_limit_bytes=plan["vmem_limit"],
            ),
        )(seq_c, adj_c, w1, b1, w2, b2, alphas)
    else:
        tr = plan["tr"]
        # Row-tiled fallback: feature GEMMs as plain XLA matmuls; the N^2
        # aggregation (+bias+PReLU) is row-tiled in Pallas so VMEM stays O(tr*N)
        # and B==1 still yields >=2 parallel grid steps.
        z1 = jnp.einsum("bnf,fh->bnh", seq_c, w1,
                        preferred_element_type=jnp.float32).astype(compute_dtype)
        h1 = _tiled_aggregate(z1, adj_c, b1, alphas[0:1], tr, compute_dtype,
                              plan["vmem_limit"])
        z2 = jnp.einsum("bnh,ho->bno", h1, w2,
                        preferred_element_type=jnp.float32).astype(compute_dtype)
        out = _tiled_aggregate(z2, adj_c, b2, alphas[1:2], tr, out_dtype,
                               plan["vmem_limit"])

    if Np != N or Op != n_out:
        out = out[:, :N, :n_out]
    return out


def init_params(key, n_in, n_h, n_out=128):
    """Deterministic parameter init (shapes match GCN(n_in,n_h) + GCN(n_h,128))."""
    k1, k2 = jax.random.split(key, 2)
    w1 = jax.random.uniform(k1, (n_in, n_h), jnp.float32, -1.0, 1.0) * (
        (6.0 / (n_in + n_h)) ** 0.5)
    w2 = jax.random.uniform(k2, (n_h, n_out), jnp.float32, -1.0, 1.0) * (
        (6.0 / (n_h + n_out)) ** 0.5)
    return {
        "w1": w1,                                     # stored pre-transposed (in, out)
        "b1": jnp.zeros((1, n_h), jnp.float32),       # bias.data.fill_(0.0)
        "w2": w2,
        "b2": jnp.zeros((1, n_out), jnp.float32),
        "alpha": jnp.full((2,), 0.25, jnp.float32),   # nn.PReLU default slope
    }


def _reference_forward(seq1, adj, params, orders, compute_dtype=jnp.bfloat16):
    """Pure-JAX reference mirroring the kernel's numerics and matmul ordering.

    The orderings differ from the f32 PyTorch module only by exact associativity
    and bf16 intermediate casts.
    """
    cdt = compute_dtype
    adj_c = adj.astype(cdt)

    def layer(x, w, b, a, agg_first):
        xc = x.astype(cdt)
        wc = w.astype(cdt)
        if agg_first:
            t = jnp.einsum("bmn,bnf->bmf", adj_c, xc,
                           preferred_element_type=jnp.float32)
            o = jnp.einsum("bnf,fh->bnh", t.astype(cdt), wc,
                           preferred_element_type=jnp.float32)
        else:
            t = jnp.einsum("bnf,fh->bnh", xc, wc,
                           preferred_element_type=jnp.float32)
            o = jnp.einsum("bmn,bnh->bmh", adj_c, t.astype(cdt),
                           preferred_element_type=jnp.float32)
        o = o + b
        return jnp.where(o > 0.0, o, a * o)

    h = layer(seq1, params["w1"], params["b1"], params["alpha"][0], orders[0])
    return layer(h, params["w2"], params["b2"], params["alpha"][1], orders[1])


if __name__ == "__main__":
    key = jax.random.PRNGKey(0)

    def make_inputs(k, B, N, n_in):
        k_seq, k_adj = jax.random.split(k)
        seq1 = jax.random.normal(k_seq, (B, N, n_in), jnp.float32)
        a = jax.random.uniform(k_adj, (B, N, N), jnp.float32)
        a = a + jnp.eye(N, dtype=jnp.float32)[None]
        adj = a / jnp.sum(a, axis=-1, keepdims=True)   # row-normalized + self-loops
        return seq1, adj

    k1, k2, kp1, kp2 = jax.random.split(key, 4)

    # Case 1: small batched graphs -> fused single-pass path (2 parallel grid steps).
    B, N, n_in, n_h = 2, 16, 32, 64
    seq1, adj = make_inputs(k1, B, N, n_in)
    params = init_params(kp1, n_in, n_h, n_out=128)
    out = jax.block_until_ready(gcn_network2_forward(seq1, adj, params, drop_rate=0.5))
    plan = _plan(B, N, n_in, n_h, 128, jnp.float32)
    assert plan["path"] == "fused", plan
    ref = _reference_forward(seq1, adj, params, plan["orders"])
    assert out.shape == (B, N, 128), out.shape
    err = float(jnp.max(jnp.abs(out - ref)))
    assert jnp.allclose(out, ref, atol=2e-2, rtol=2e-2), f"fused mismatch: {err}"

    # Case 2: single larger graph (B=1) -> row-tiled fallback (>=2 parallel row tiles).
    B2, N2, n_in2, n_h2 = 1, 256, 48, 64
    seq2, adj2 = make_inputs(k2, B2, N2, n_in2)
    params2 = init_params(kp2, n_in2, n_h2, n_out=128)
    out2 = jax.block_until_ready(gcn_network2_forward(seq2, adj2, params2))
    plan2 = _plan(B2, N2, n_in2, n_h2, 128, jnp.float32)
    assert plan2["path"] == "tiled", plan2
    ref2 = _reference_forward(seq2, adj2, params2, plan2["orders"])
    assert out2.shape == (B2, N2, 128), out2.shape
    err2 = float(jnp.max(jnp.abs(out2 - ref2)))
    assert jnp.allclose(out2, ref2, atol=2e-2, rtol=2e-2), f"tiled mismatch: {err2}"

    print("KERNEL_OK")
</pallas_src>

<mosaic_0001>
module attributes {stable_mosaic.version = 11 : i64} {
  func.func @kernel(%arg0: i32, %arg1: memref<1x16x128xbf16, #tpu.memory_space<vmem>>, %arg2: memref<1x16x16xbf16, #tpu.memory_space<vmem>>, %arg3: memref<128x128xbf16, #tpu.memory_space<vmem>>, %arg4: memref<1x128xf32, #tpu.memory_space<vmem>>, %arg5: memref<128x128xbf16, #tpu.memory_space<vmem>>, %arg6: memref<1x128xf32, #tpu.memory_space<vmem>>, %arg7: memref<2xf32, #tpu.memory_space<smem>>, %arg8: memref<1x16x128xf32, #tpu.memory_space<vmem>>) attributes {dimension_semantics = [#tpu.dimension_semantics<parallel>], iteration_bounds = array<i64: 2>, scalar_prefetch = 0 : i64, scratch_operands = 0 : i64, tpu.core_type = #tpu.core_type<tc>, window_params = [{transform_indices = @transform_0, window_bounds = array<i64: 1, 16, 128>}, {transform_indices = @transform_1, window_bounds = array<i64: 1, 16, 16>}, {pipeline_mode = #tpu.pipeline_mode<synchronous>, transform_indices = @transform_2, window_bounds = array<i64: 128, 128>}, {pipeline_mode = #tpu.pipeline_mode<synchronous>, transform_indices = @transform_3, window_bounds = array<i64: 1, 128>}, {pipeline_mode = #tpu.pipeline_mode<synchronous>, transform_indices = @transform_4, window_bounds = array<i64: 128, 128>}, {pipeline_mode = #tpu.pipeline_mode<synchronous>, transform_indices = @transform_5, window_bounds = array<i64: 1, 128>}, {transform_indices = @transform_6, window_bounds = array<i64: 2>}, {transform_indices = @transform_7, window_bounds = array<i64: 1, 16, 128>}]} {
    %c0 = arith.constant 0 : index
    %0 = memref.load %arg7[%c0] : memref<2xf32, #tpu.memory_space<smem>>
    %c1 = arith.constant 1 : index
    %1 = memref.load %arg7[%c1] : memref<2xf32, #tpu.memory_space<smem>>
    %c0_0 = arith.constant 0 : index
    %c0_1 = arith.constant 0 : index
    %c0_2 = arith.constant 0 : index
    %2 = vector.load %arg1[%c0_0, %c0_1, %c0_2] : memref<1x16x128xbf16, #tpu.memory_space<vmem>>, vector<1x16x128xbf16>
    %c0_3 = arith.constant 0 : index
    %c0_4 = arith.constant 0 : index
    %c0_5 = arith.constant 0 : index
    %3 = vector.load %arg2[%c0_3, %c0_4, %c0_5] : memref<1x16x16xbf16, #tpu.memory_space<vmem>>, vector<1x16x16xbf16>
    "tpu.trace_start"() <{level = 10 : i32, message = "bmn,bnf->bmf"}> : () -> ()
    %cst = arith.constant dense<0.000000e+00> : vector<1x16x128xf32>
    %4 = tpu.matmul %3, %2, %cst {dimension_numbers = #tpu.dot_dimension_numbers<[2], [1], [1], [2], [0, 0, 0, 1, 1, 2], [0], [0]>} : vector<1x16x16xbf16>, vector<1x16x128xbf16>, vector<1x16x128xf32> -> vector<1x16x128xf32>
    "tpu.trace_stop"() : () -> ()
    %5 = arith.truncf %4 : vector<1x16x128xf32> to vector<1x16x128xbf16>
    %6 = vector.shape_cast %5 : vector<1x16x128xbf16> to vector<16x128xbf16>
    %c0_6 = arith.constant 0 : index
    %c0_7 = arith.constant 0 : index
    %7 = vector.load %arg3[%c0_6, %c0_7] : memref<128x128xbf16, #tpu.memory_space<vmem>>, vector<128x128xbf16>
    %cst_8 = arith.constant dense<0.000000e+00> : vector<16x128xf32>
    %8 = tpu.matmul %6, %7, %cst_8 {dimension_numbers = #tpu.dot_dimension_numbers<[1], [0], [0], [1], [0, 0, 1, 1], [], []>} : vector<16x128xbf16>, vector<128x128xbf16>, vector<16x128xf32> -> vector<16x128xf32>
    %9 = vector.shape_cast %8 : vector<16x128xf32> to vector<1x16x128xf32>
    %c0_9 = arith.constant 0 : index
    %c0_10 = arith.constant 0 : index
    %10 = vector.load %arg4[%c0_9, %c0_10] : memref<1x128xf32, #tpu.memory_space<vmem>>, vector<1x128xf32>
    %11 = vector.shape_cast %10 : vector<1x128xf32> to vector<1x1x128xf32>
    %12 = vector.broadcast %11 : vector<1x1x128xf32> to vector<1x16x128xf32>
    %13 = arith.addf %9, %12 : vector<1x16x128xf32>
    %cst_11 = arith.constant 0.000000e+00 : f32
    %14 = vector.broadcast %cst_11 : f32 to vector<1x16x128xf32>
    %15 = arith.cmpf ogt, %13, %14 : vector<1x16x128xf32>
    %16 = vector.broadcast %0 : f32 to vector<1x16x128xf32>
    %17 = arith.mulf %16, %13 : vector<1x16x128xf32>
    %18 = arith.select %15, %13, %17 : vector<1x16x128xi1>, vector<1x16x128xf32>
    %19 = arith.truncf %18 : vector<1x16x128xf32> to vector<1x16x128xbf16>
    %c0_12 = arith.constant 0 : index
    %c0_13 = arith.constant 0 : index
    %c0_14 = arith.constant 0 : index
    %20 = vector.load %arg2[%c0_12, %c0_13, %c0_14] : memref<1x16x16xbf16, #tpu.memory_space<vmem>>, vector<1x16x16xbf16>
    "tpu.trace_start"() <{level = 10 : i32, message = "bmn,bnf->bmf"}> : () -> ()
    %cst_15 = arith.constant dense<0.000000e+00> : vector<1x16x128xf32>
    %21 = tpu.matmul %20, %19, %cst_15 {dimension_numbers = #tpu.dot_dimension_numbers<[2], [1], [1], [2], [0, 0, 0, 1, 1, 2], [0], [0]>} : vector<1x16x16xbf16>, vector<1x16x128xbf16>, vector<1x16x128xf32> -> vector<1x16x128xf32>
    "tpu.trace_stop"() : () -> ()
    %22 = arith.truncf %21 : vector<1x16x128xf32> to vector<1x16x128xbf16>
    %23 = vector.shape_cast %22 : vector<1x16x128xbf16> to vector<16x128xbf16>
    %c0_16 = arith.constant 0 : index
    %c0_17 = arith.constant 0 : index
    %24 = vector.load %arg5[%c0_16, %c0_17] : memref<128x128xbf16, #tpu.memory_space<vmem>>, vector<128x128xbf16>
    %cst_18 = arith.constant dense<0.000000e+00> : vector<16x128xf32>
    %25 = tpu.matmul %23, %24, %cst_18 {dimension_numbers = #tpu.dot_dimension_numbers<[1], [0], [0], [1], [0, 0, 1, 1], [], []>} : vector<16x128xbf16>, vector<128x128xbf16>, vector<16x128xf32> -> vector<16x128xf32>
    %26 = vector.shape_cast %25 : vector<16x128xf32> to vector<1x16x128xf32>
    %c0_19 = arith.constant 0 : index
    %c0_20 = arith.constant 0 : index
    %27 = vector.load %arg6[%c0_19, %c0_20] : memref<1x128xf32, #tpu.memory_space<vmem>>, vector<1x128xf32>
    %28 = vector.shape_cast %27 : vector<1x128xf32> to vector<1x1x128xf32>
    %29 = vector.broadcast %28 : vector<1x1x128xf32> to vector<1x16x128xf32>
    %30 = arith.addf %26, %29 : vector<1x16x128xf32>
    %cst_21 = arith.constant 0.000000e+00 : f32
    %31 = vector.broadcast %cst_21 : f32 to vector<1x16x128xf32>
    %32 = arith.cmpf ogt, %30, %31 : vector<1x16x128xf32>
    %33 = vector.broadcast %1 : f32 to vector<1x16x128xf32>
    %34 = arith.mulf %33, %30 : vector<1x16x128xf32>
    %35 = arith.select %32, %30, %34 : vector<1x16x128xi1>, vector<1x16x128xf32>
    %c0_22 = arith.constant 0 : index
    %c0_23 = arith.constant 0 : index
    %c0_24 = arith.constant 0 : index
    %36 = vector.load %arg8[%c0_22, %c0_23, %c0_24] : memref<1x16x128xf32, #tpu.memory_space<vmem>>, vector<1x16x128xf32>
    tpu.vector_store %arg8[%c0_22, %c0_23, %c0_24], %35 {strides = array<i32>} : memref<1x16x128xf32, #tpu.memory_space<vmem>>, vector<1x16x128xf32>,
    return
  }
  func.func @transform_0(%arg0: i32) -> (i32, i32, i32) {
    %c0_i32 = arith.constant 0 : i32
    %c0_i32_0 = arith.constant 0 : i32
    %c0_i32_1 = arith.constant 0 : i32
    return %arg0, %c0_i32, %c0_i32_0 : i32, i32, i32
  }
  func.func @transform_1(%arg0: i32) -> (i32, i32, i32) {
    %c0_i32 = arith.constant 0 : i32
    %c0_i32_0 = arith.constant 0 : i32
    %c0_i32_1 = arith.constant 0 : i32
    return %arg0, %c0_i32, %c0_i32_0 : i32, i32, i32
  }
  func.func @transform_2(%arg0: i32) -> (i32, i32) {
    %c0_i32 = arith.constant 0 : i32
    %c0_i32_0 = arith.constant 0 : i32
    %c0_i32_1 = arith.constant 0 : i32
    return %c0_i32, %c0_i32_0 : i32, i32
  }
  func.func @transform_3(%arg0: i32) -> (i32, i32) {
    %c0_i32 = arith.constant 0 : i32
    %c0_i32_0 = arith.constant 0 : i32
    %c0_i32_1 = arith.constant 0 : i32
    return %c0_i32, %c0_i32_0 : i32, i32
  }
  func.func @transform_4(%arg0: i32) -> (i32, i32) {
    %c0_i32 = arith.constant 0 : i32
    %c0_i32_0 = arith.constant 0 : i32
    %c0_i32_1 = arith.constant 0 : i32
    return %c0_i32, %c0_i32_0 : i32, i32
  }
  func.func @transform_5(%arg0: i32) -> (i32, i32) {
    %c0_i32 = arith.constant 0 : i32
    %c0_i32_0 = arith.constant 0 : i32
    %c0_i32_1 = arith.constant 0 : i32
    return %c0_i32, %c0_i32_0 : i32, i32
  }
  func.func @transform_6(%arg0: i32) -> i32 {
    %c0_i32 = arith.constant 0 : i32
    %c0_i32_0 = arith.constant 0 : i32
    return %c0_i32 : i32
  }
  func.func @transform_7(%arg0: i32) -> (i32, i32, i32) {
    %c0_i32 = arith.constant 0 : i32
    %c0_i32_0 = arith.constant 0 : i32
    %c0_i32_1 = arith.constant 0 : i32
    return %arg0, %c0_i32, %c0_i32_0 : i32, i32, i32
  }
}

</mosaic_0001>

<bundles_post_ra>
// kernel: tpu_custom_call.1
= control target key start
LH: loop header
LB: loop body
LE: loop exit
PB: predicated region body
PF: predicated region fallthrough
CT: control target
= control target key end

     0   :  { %s1493_s0 = inlined_call_operand.hbm [shape: bf16[2,16,128], index: 0, kind: input, shape index: {}]   ;;  %s1494_s1 = inlined_call_operand.hbm [shape: bf16[2,16,16], index: 1, kind: input, shape index: {}]   ;;  %s1495_s2 = inlined_call_operand.hbm [shape: bf16[128,128], index: 2, kind: input, shape index: {}]   ;;  %s1496_s3 = inlined_call_operand.vmem [shape: f32[1,128], index: 3, kind: input, shape index: {}]   ;;  %s1497_s4 = inlined_call_operand.hbm [shape: bf16[128,128], index: 4, kind: input, shape index: {}]   ;;  %s1498_s5 = inlined_call_operand.vmem [shape: f32[1,128], index: 5, kind: input, shape index: {}]   ;;  %s1499_s6 = inlined_call_operand.vmem [shape: f32[2], index: 6, kind: input, shape index: {}]   ;;  %s1500_s7 = inlined_call_operand.hbm [shape: f32[2,16,128], index: 7, kind: output, shape index: {}]  }
   0x1   :  { %1505 = sst [smem:[#allocation20_spill]] %s1493_s0 }
   0x2   :  { %1506 = sst [smem:[#allocation21_spill]] %s1495_s2 }
   0x3   :  { %1507 = sst [smem:[#allocation22_spill]] %s1497_s4 }
   0x4   :  { %1508 = sst [smem:[#allocation23_spill]] %s1499_s6 }
   0x5   :  { %12 = vsyncpa [#allocation3], 0 }
   0x6   :  { %14 = vsyncpa [#allocation3 + $0x1], 0 }
   0x7   :  { %15 = vsyncpa [#allocation7], 0 }
   0x8   :  { %17 = vsyncpa [#allocation7 + $0x1], 0 }
   0x9   :  { %18 = vsyncpa [#allocation10], 0 }
   0xa   :  { %19 = vsyncpa [#allocation5], 0 }
   0xb   :  { %20 = vsyncpa [#allocation4], 0 }
   0xc   :  { %22 = vsyncpa [#allocation4 + $0x1], 0  ;;  %s1278_s24 = smov 0   ;;  %s1280_s25 = smov 0  }
   0xd   :  { %s1282_s26 = smov 0   ;;  %s1284_s27 = smov 0  }
   0xe LB: > { %s1299_s28 = sadd.s32 4294967295, %s1229_s27   ;;  %s799_s29 = sadd.s32 4294967294, %s1229_s27   ;;  %s1229_s27 = sphi %s1284_s27, %s1527_s27   ;;  %s1225_s26 = sphi %s1282_s26, %s1526_s26   ;;  %s1221_s25 = sphi %s1280_s25, %s1525_s25   ;;  %s1217_s24 = sphi %s1278_s24, %s1524_s24  }
   0xf   : > { %p48_p0 = scmp.ne.s32.totalorder %s1221_s25, %s1217_s24  ;;  %p49_p1 = scmp.eq.s32.totalorder %s1299_s28, 0 }
  0x10   : > { %p203_p2 = scmp.eq.s32.totalorder %s1299_s28, 1  ;;  %p209_p3 = scmp.eq.s32.totalorder %s799_s29, 1 }
  0x11   : > { %p1308_p4 = por %p49_p1, %p48_p0  ;;  %p800_p5 = scmp.ge.s32.totalorder %s1229_s27, 1 }
  0x12   : > { %p1313_p6 = por %p209_p3, %p48_p0  ;;  %p216_p7 = scmp.lt.s32.totalorder %s1229_s27, 3 }
  0x13   : > { %s1511_s2 = sld [smem:[#allocation21_spill]]  ;;  %s1231_s13 = smov [#allocation8]  }
  0x14   : > { %p1321_p8 = pnand %p800_p5, %p216_p7  ;;  %s229_s14 = sshll.u32 %s1231_s13, 4  ;;  %s230_s14 = int_to_ptr.vmem [resolvable:$true] %s229_s14 }
  0x15   : > { %s1514_s4 = sld [smem:[#allocation22_spill]]  ;;  %s1501_s19 = smov 64  }
  0x16   : > { %p942_p9 = pneg %p1321_p8  ;;  %s1503_s20 = smov 4  }
  0x17   : > { %s1234_s21 = smov [#allocation9]   ;;  %s1515_s6 = sld [smem:[#allocation23_spill]] }
  0x18   : > { %p1329_p10 = pnand %p942_p9, %p49_p1  ;;  %s246_s22 = sshll.u32 %s1234_s21, 4  ;;  %s247_s22 = int_to_ptr.vmem [resolvable:$true] %s246_s22 }
  0x19   : > { %s227_s11 = sshll.u32 %s1511_s2, 4  ;;  %s1235_s10 = smov [#allocation11]   ;;  %s228_s11 = int_to_ptr.hbm [resolvable:$true] %s227_s11 }
  0x1a   : > { %945 = dma.hbm_to_vmem [thread:$0]  (!%p1329_p10), %s228_s11, 1024, %s230_s14, [#allocation7], %s1501_s19, %s1501_s19, %s1503_s20  }
  0x1b   : > { %s244_s18 = sshll.u32 %s1514_s4, 4  ;;  %s1353_s11 = sadd.s32 1, %s1229_s27   ;;  %s245_s18 = int_to_ptr.hbm [resolvable:$true] %s244_s18 }
  0x1c   : > { %948 = dma.hbm_to_vmem [thread:$0]  (!%p1329_p10), %s245_s18, 1024, %s247_s22, [#allocation10], %s1501_s19, %s1501_s19, %s1503_s20  }
  0x1d   : > { %s262_s9 = sshll.u32 %s1515_s6, 4  ;;  %s32_s13 = ssub.s32 %s1229_s27, %s1353_s11  ;;  %s263_s9 = int_to_ptr.vmem [resolvable:$true] %s262_s9 }
  0x1e   : > { %951 = dma.vmem_to_smem (!%p1329_p10), %s263_s9, 16, %s1235_s10, [#allocation5]  }
  0x1f   : > { %s35_s14 = sadd.s32 1, %s1225_s26  ;;  %p33_p12 = scmp.eq.s32.totalorder %s32_s13, 0 }
  0x20   : > { %p42_p13 = scmp.ne.s32.totalorder %s1225_s26, %s1221_s25  ;;  %p43_p0 = scmp.eq.s32.totalorder %s1229_s27, 0 }
  0x21   : > { %p966_p3 = scmp.lt.s32.totalorder %s1229_s27, 2  ;;  %s273_s15 = sand.u32 1, %s1225_s26  }
  0x22   : > { %s1363_s16 = scalar_select %p33_p12, %s1225_s26, %s35_s14  }
  0x23   : > { %p44_p5 = por %p43_p0, %p42_p13  ;;  %p1367_p7 = por %p203_p2, %p42_p13 }
  0x24   : > { %1516 = sst [smem:[#allocation19_spill]] %s1363_s16  ;;  %s902_s18 = sshll.u32 %s1229_s27, 3 }
  0x25   : > { %s805_s21 = sshll.u32 %s273_s15, 3  ;;  %s1518_s0 = sld [smem:[#allocation20_spill]] }
  0x26   : > { %s277_s10 = scalar_lea.vmem [#allocation2], %s805_s21  ;;  %p1378_p9 = pnand %p966_p3, %p44_p5 }
  0x27   : > { %s285_s13 = sshll.u32 %s277_s10, 4  ;;  %s304_s2 = scalar_lea.hbm %s1494_s1, %s902_s18  ;;  %s286_s13 = int_to_ptr.vmem [resolvable:$true] %s285_s13 }
  0x28   : > { %s299_s4 = scalar_lea.vmem [#allocation6], %s805_s21  ;;  %s305_s22 = sshll.u32 %s304_s2, 4  ;;  %s306_s22 = int_to_ptr.hbm [resolvable:$true] %s305_s22 }
  0x29   : > { %s1385_s6 = sshll.u32 %s299_s4, 4  ;;  %s274_s23 = scalar_lea.sflag [#allocation3], %s273_s15  ;;  %s308_s6 = int_to_ptr.vmem [resolvable:$true] %s1385_s6 }
  0x2a   : > { %p1091_p10 = pneg %p1378_p9 }
  0x2b   : > { %s282_s29 = scalar_lea.hbm %s1518_s0, %s902_s18  ;;  %s1094_s20 = scalar_lea.hbm %s1518_s0, 16 }
  0x2c   : > { %s283_s9 = sshll.u32 %s282_s29, 4  ;;  %s284_s9 = int_to_ptr.hbm [resolvable:$true] %s283_s9 }
  0x2d   : > { %s1087_s29 = sshra.s32 %s284_s9, 4  ;;  %s1088_s29 = int_to_ptr.hbm [resolvable:$true] %s1087_s29 }
  0x2e   : > { %s1089_s10 = scalar_lea.hbm %s1088_s29, 8  ;;  %p1095_p0 = scmp.lt.s32.totalorder %s1088_s29, %s1518_s0 }
  0x2f   : > { %p1090_p2 = scmp.ne.s32.totalorder %s1088_s29, %s1089_s10  ;;  %p1096_p3 = scmp.lt.s32.totalorder %s1094_s20, %s1089_s10 }
  0x31   : > { %p1092_p12 = pnand %p1091_p10, %p1090_p2  ;;  %p1097_p5 = por %p1096_p3, %p1095_p0 }
  0x33   : > { %p1093_p13 = pneg %p1092_p12 }
  0x35   : > { %p1098_p11 = pnand %p1097_p5, %p1093_p13 }
  0x37   : > { %1101 = shalt.err (!%p1098_p11)
}
  0x38   : > { %s1520_s2 = smov 4   ;;  %s1521_s4 = smov 64  }
  0x39   : > { %955 = dma.hbm_to_vmem [thread:$0]  (!%p1378_p9), %s284_s9, 128, %s286_s13, %s274_s23, %s1521_s4, %s1521_s4, %s1520_s2  }
  0x3a   : > { %s295_s16 = sand.u32 1, %s1229_s27   ;;  %s1117_s19 = sshra.s32 %s306_s22, 4  ;;  %s1118_s19 = int_to_ptr.hbm [resolvable:$true] %s1117_s19 }
  0x3b   : > { %s296_s15 = scalar_lea.sflag [#allocation7], %s295_s16  ;;  %s1119_s29 = scalar_lea.hbm %s1118_s19, 8 }
  0x3c   : > { %p1120_p2 = scmp.ne.s32.totalorder %s1118_s19, %s1119_s29  ;;  %s1124_s18 = scalar_lea.hbm %s1494_s1, 16 }
  0x3d   : > { %p1125_p13 = scmp.lt.s32.totalorder %s1118_s19, %s1494_s1  ;;  %p1126_p0 = scmp.lt.s32.totalorder %s1124_s18, %s1119_s29 }
  0x3e   : > { %p1122_p11 = pnand %p1120_p2, %p1091_p10 }
  0x3f   : > { %p1127_p3 = por %p1126_p0, %p1125_p13 }
  0x40   : > { %p1123_p12 = pneg %p1122_p11 }
  0x42   : > { %p1128_p5 = pnand %p1127_p3, %p1123_p12 }
  0x44   : > { %1131 = shalt.err (!%p1128_p5)
}
  0x45   : > { %958 = dma.hbm_to_vmem [thread:$0]  (!%p1378_p9), %s306_s22, 128, %s308_s6, %s296_s15, %s1521_s4, %s1521_s4, %s1520_s2  }
  0x46   : > { %319 = sbr.rel (%p1321_p8) target bundleno = 674 (0x2a2), region = 48  ;;  %s1422_s9 = sand.u32 (!%p1321_p8), 1, %s1221_s25  }
  0x47   : > { %s812_s0 = sshll.u32 (!%p1321_p8), %s1422_s9, 3  ;;  %s322_s13 = scalar_lea.sflag (!%p1321_p8), [#allocation3], %s1422_s9 }
  0x48   : > { %s325_s23 = scalar_lea.vmem (!%p1321_p8), [#allocation2], %s812_s0 }
  0x4b   : > { %1192 = dma.done.wait (%p1308_p4), %s322_s13, 128  }
  0x4c   : > { %1194 = vsyncadd (%p1308_p4), %s322_s13, 4294967168  ;;  %s331_s6 = sand.u32 1, %s1299_s28   ;;  %s1431_s12 = scalar_lea.vmem [#allocation6], %s812_s0 }
  0x4d   : > { %s332_s14 = scalar_lea.sflag [#allocation7], %s331_s6 }
  0x4e   : > { %1196 = dma.done.wait (%p1308_p4), %s332_s14, 128  }
  0x4f   : > { %1198 = vsyncadd (%p1308_p4), %s332_s14, 4294967168 }
  0x50   : > { %1200 = dma.done.wait (%p49_p1), [#allocation7], 1024  }
  0x51   : > { %1202 = vsyncadd (%p49_p1), [#allocation7], 4294966272 }
  0x52   : > { %1204 = dma.done.wait (%p49_p1), [#allocation10], 1024  }
  0x53   : > { %1206 = vsyncadd (%p49_p1), [#allocation10], 4294966272 }
  0x54   : > { %1208 = dma.done.wait (%p49_p1), [#allocation5], 16  }
  0x55   : > { %1210 = vsyncadd (%p49_p1), [#allocation5], 4294967280 }
  0x56   : > { %356 = sfence }
  0x57   : > { %v904_v0 = vld [vmem:[%s325_s23] sm:$0xff]  ;;  %v913_v1 = vld [vmem:[#allocation8 + $0x38] sm:$0xff]  ;;  %vm406_vm0 = vcmask 130048   ;;  %v912_v3 = vld [vmem:[#allocation8 + $0x30] sm:$0xff]  ;;  %s389_s30 = sld [smem:[#allocation11]]  ;;  %s817_s19 = sshll.u32 %s1422_s9, 4 }
  0x58   : > { %v905_v2 = vld [vmem:[%s1431_s12] sm:$0xff]  ;;  %417 = vmatpush.bf16.msra.mxu0 %v904_v0  ;;  %496 = vmatpush.bf16.msra.mxu1 %v913_v1  ;;  %v911_v4 = vld [vmem:[#allocation8 + $0x28] sm:$0xff]  ;;  %v910_v5 = vld [vmem:[#allocation8 + $0x20] sm:$0xff]  ;;  %s818_s4 = sld [smem:[#allocation11 + $0x1]]  ;;  %s923_s29 = sshll.u32 %s1299_s28, 4 }
  0x59   : > { %v909_v6 = vld [vmem:[#allocation8 + $0x18] sm:$0xff]  ;;  %v908_v7 = vld [vmem:[#allocation8 + $0x10] sm:$0xff]  ;;  %v907_v8 = vld [vmem:[#allocation8 + $0x8] sm:$0xff]  ;;  %s668_s18 = scalar_lea.hbm %s1500_s7, %s923_s29  ;;  %s387_s21 = scalar_lea.vmem [#allocation12], %s817_s19 }
  0x5a   : > { %v906_v9 = vld [vmem:[#allocation8] sm:$0xff]  ;;  %v922_v17 = vld [vmem:[#allocation9 + $0x38] sm:$0xff]  ;;  %v921_v18 = vld [vmem:[#allocation9 + $0x30] sm:$0xff]  ;;  %s669_s0 = sshll.u32 %s387_s21, 4  ;;  %s671_s13 = sshll.u32 %s668_s18, 4  ;;  %s670_s0 = int_to_ptr.vmem [resolvable:$true] %s669_s0  ;;  %s672_s13 = int_to_ptr.hbm [resolvable:$true] %s671_s13 }
  0x5b   : > { %827 = vmatmul.msk.bf16.vlgmr.msra.gmra.mxu0 %vm406_vm0, %v905_v2  ;;  %627 = vmatpush.bf16.msra.mxu3 %v922_v17  ;;  %v1010_v19 = vld [vmem:[%s1496_s3] ss:$0 sm:$0xff]  ;;  %v920_v20 = vld [vmem:[#allocation9 + $0x28] sm:$0xff]  ;;  %v914_v36 = vld [vmem:[%s1431_s12] sm:$0xff]  ;;  %s657_s28 = scalar_lea.sflag [#allocation4], %s1422_s9  ;;  %s1161_s23 = sshra.s32 %s672_s13, 4  ;;  %s1162_s23 = int_to_ptr.hbm [resolvable:$true] %s1161_s23 }
  0x5c   : > { %497 = vmatpush.bf16.msra.mxu1 %v912_v3  ;;  %v919_v23 = vld [vmem:[#allocation9 + $0x20] sm:$0xff]  ;;  %v918_v37 = vld [vmem:[#allocation9 + $0x18] sm:$0xff]  ;;  %v917_v38 = vld [vmem:[#allocation9 + $0x10] sm:$0xff]  ;;  %s1163_s6 = scalar_lea.hbm %s1162_s23, 16  ;;  %p1168_p9 = scmp.lt.s32.totalorder %s1162_s23, %s1500_s7 }
  0x5d   : > { %v518_v24 = vstv %s389_s30  ;;  %v916_v39 = vld [vmem:[#allocation9 + $0x8] sm:$0xff]  ;;  %v915_v40 = vld [vmem:[#allocation9] sm:$0xff]  ;;  %p1164_p1 = scmp.ne.s32.totalorder %s1162_s23, %s1163_s6  ;;  %s1167_s30 = scalar_lea.hbm %s1500_s7, 32 }
  0x5e   : > { %v1011_v48 = vld [vmem:[%s1498_s5] ss:$0 sm:$0xff]  ;;  %v649_v50 = vstv %s818_s4  ;;  %p1169_p10 = scmp.lt.s32.totalorder %s1167_s30, %s1163_s6 }
  0x5f   : > { %628 = vmatpush.bf16.msra.mxu3 %v921_v18  ;;  %p1165_p4 = pnand %p1164_p1, %p1367_p7 }
  0x60   : > { %498 = vmatpush.bf16.msra.mxu1 %v911_v4  ;;  %p1170_p2 = por %p1169_p10, %p1168_p9 }
  0x61   : > { %p1166_p8 = pneg %p1165_p4 }
  0x63   : > { %629 = vmatpush.bf16.msra.mxu3 %v920_v20  ;;  %p1171_p11 = pnand %p1170_p2, %p1166_p8 }
  0x64   : > { %499 = vmatpush.bf16.msra.mxu1 %v910_v5 }
  0x67   : > { %630 = vmatpush.bf16.msra.mxu3 %v919_v23 }
  0x68   : > { %500 = vmatpush.bf16.msra.mxu1 %v909_v6 }
  0x6b   : > { %631 = vmatpush.bf16.msra.mxu3 %v918_v37 }
  0x6c   : > { %501 = vmatpush.bf16.msra.mxu1 %v908_v7 }
  0x6f   : > { %632 = vmatpush.bf16.msra.mxu3 %v917_v38 }
  0x70   : > { %502 = vmatpush.bf16.msra.mxu1 %v907_v8 }
  0x73   : > { %633 = vmatpush.bf16.msra.mxu3 %v916_v39 }
  0x74   : > { %503 = vmatpush.bf16.msra.mxu1 %v906_v9 }
  0x77   : > { %634 = vmatpush.bf16.msra.mxu3 %v915_v40 }
  0xd8   : > { %v419_v10 = vpop.f32.mrf.mxu0 }
  0xd9   : > { %v424_v11 = vpack.c.bf16 %v419_v10, %v419_v10 }
  0xdb   : > { %v444_v14 = vunpack.c.l.b16 %v424_v11 }
  0xe0   : > { %v421_v12 = vpop.f32.mrf.mxu0 }
  0xe1   : > { %v425_v13 = vpack.c.bf16 %v421_v12, %v421_v12 }
  0xe3   : > { %v445_v15 = vunpack.c.l.b16 %v425_v13 }
  0xe5   : > { %v446_v16 = vpack.c.b16 %v445_v15, %v444_v14 }
  0xe7   : > { %504 = vmatmul.bf16.vlgmr.msra.gmra.mxu1 %v446_v16 }
 0x164   : > { %v505_v21 = vpop.f32.mrf.mxu1 }
 0x165   : > { %v514_v22 = vadd.f32 %v1010_v19, %v505_v21 }
 0x167   : > { %v519_v25 = vmul.f32 %v518_v24, %v514_v22  ;;  %vm516_vm1 = vcmp.gt.f32.partialorder %v514_v22, 0.0 }
 0x169   : > { %v521_v28 = vsel %vm516_vm1, %v514_v22, %v519_v25 }
 0x16a   : > { %v523_v30 = vpack.c.bf16 %v521_v28, %v521_v28 }
 0x16c   : > { %v507_v26 = vpop.f32.mrf.mxu1  ;;  %v534_v33 = vunpack.c.l.b16 %v523_v30 }
 0x16d   : > { %v515_v27 = vadd.f32 %v1010_v19, %v507_v26 }
 0x16f   : > { %v520_v29 = vmul.f32 %v518_v24, %v515_v27  ;;  %vm517_vm2 = vcmp.gt.f32.partialorder %v515_v27, 0.0 }
 0x171   : > { %v522_v31 = vsel %vm517_vm2, %v515_v27, %v520_v29 }
 0x172   : > { %v524_v32 = vpack.c.bf16 %v522_v31, %v522_v31 }
 0x174   : > { %v535_v34 = vunpack.c.l.b16 %v524_v32 }
 0x176   : > { %v536_v35 = vpack.c.b16 %v535_v34, %v534_v33 }
 0x178   : > { %548 = vmatpush.bf16.msra.mxu2 %v536_v35 }
 0x17b   : > { %864 = vmatmul.msk.bf16.vlgmr.msra.gmra.mxu2 %vm406_vm0, %v914_v36 }
 0x1fe   : > { %v550_v41 = vpop.f32.mrf.mxu2 }
 0x1ff   : > { %v555_v42 = vpack.c.bf16 %v550_v41, %v550_v41 }
 0x201   : > { %v575_v45 = vunpack.c.l.b16 %v555_v42 }
 0x206   : > { %v552_v43 = vpop.f32.mrf.mxu2 }
 0x207   : > { %v556_v44 = vpack.c.bf16 %v552_v43, %v552_v43 }
 0x209   : > { %v576_v46 = vunpack.c.l.b16 %v556_v44 }
 0x20b   : > { %v577_v47 = vpack.c.b16 %v576_v46, %v575_v45 }
 0x20d   : > { %635 = vmatmul.bf16.vlgmr.msra.gmra.mxu3 %v577_v47 }
 0x290   : > { %v636_v49 = vpop.f32.mrf.mxu3 }
 0x291   : > { %v645_v51 = vadd.f32 %v1011_v48, %v636_v49 }
 0x293   : > { %vm647_vm3 = vcmp.gt.f32.partialorder %v645_v51, 0.0  ;;  %v650_v52 = vmul.f32 %v649_v50, %v645_v51 }
 0x295   : > { %v652_v53 = vsel %vm647_vm3, %v645_v51, %v650_v52 }
 0x296   : > { %654 = vst [vmem:[%s387_s21] sm:$0xff] %v652_v53 }
 0x298   : > { %v638_v54 = vpop.f32.mrf.mxu3 }
 0x299   : > { %v646_v55 = vadd.f32 %v1011_v48, %v638_v54 }
 0x29b   : > { %vm648_vm4 = vcmp.gt.f32.partialorder %v646_v55, 0.0  ;;  %v651_v56 = vmul.f32 %v649_v50, %v646_v55 }
 0x29d   : > { %v653_v57 = vsel %vm648_vm4, %v646_v55, %v651_v56 }
 0x29e   : > { %655 = vst [vmem:[%s387_s21 + $0x8] sm:$0xff] %v653_v57 }
 0x29f   : > { %1174 = shalt.err (!%p1171_p11)
}
 0x2a0   : > { %s1236_s9 = smov 128   ;;  %s1237_s4 = smov 8  }
 0x2a1   : > { %940 = dma.vmem_to_hbm [thread:$0]  (%p1367_p7), %s670_s0, 256, %s672_s13, %s657_s28, %s1236_s9, %s1236_s9, %s1237_s4  }
 0x2a2 PF: > { %s686_s16 = sand.u32 1, %s1217_s24   ;;  %p1522_p12 = scmp.ge.s32.totalorder %s1229_s27, 2 }
 0x2a3   : > { %s687_s15 = scalar_lea.sflag [#allocation4], %s686_s16 }
 0x2a4   : > { %p960_p13 = pnand %p1522_p12, %p1313_p6 }
 0x2a6   : > { %p961_p0 = pneg %p960_p13 }
 0x2a8   : > { %1212 = dma.done.wait (%p961_p0), %s687_s15, 256  }
 0x2a9   : > { %1214 = vsyncadd (%p961_p0), %s687_s15, 4294967040  ;;  %s1523_s19 = sld [smem:[#allocation19_spill]]  ;;  %p25_p3 = scmp.ge.s32.totalorder %s1353_s11, 4  }
 0x2aa   : > { %s1524_s24 = smov %s1221_s25  ;;  %s1525_s25 = smov %s1225_s26 }
 0x2ab   : > { %s1527_s27 = smov %s1353_s11  ;;  %27 = sbr.rel (!%p25_p3) target bundleno = 14 (0xe), region = 119 }
 0x2af   : > { %s1526_s26 = smov %s1523_s19 }
 0x2b0   :  { %693 = vsyncpa [#allocation3], 1 }
 0x2b1   :  { %695 = vsyncpa [#allocation3 + $0x1], 1 }
 0x2b2   :  { %696 = vsyncpa [#allocation7], 1 }
 0x2b3   :  { %698 = vsyncpa [#allocation7 + $0x1], 1 }
 0x2b4   :  { %699 = vsyncpa [#allocation10], 1 }
 0x2b5   :  { %700 = vsyncpa [#allocation4], 1 }
 0x2b6   :  { %702 = vsyncpa [#allocation4 + $0x1], 1 }
 0x2b7   :  { %703 = vsyncpa [#allocation5], 1 }
 0x2b8   :  { %705 = vsyncpa [#allocation5 + $0x1], 1 }

</bundles_post_ra>
